<compile_context>
chip_gen: v6e
topology: v6e:2x2x1
jax: 0.10.0
libtpu: 0.0.40
codegen_flags: <defaults>
</compile_context>

<pallas_src>
import functools

import jax
import jax.numpy as jnp
from jax.experimental import pallas as pl
from jax.experimental.pallas import tpu as pltpu


def _round_up(x, m):
    return ((x + m - 1) // m) * m


def _choose_lane_tile(L, Cin, Cout, weight_budget_bytes=32 << 20):
    """Pick the lane-tile TL (multiple of 128) from a VMEM budget.

    Dominant VMEM consumer is the double-buffered pair of weight blocks:
        2 (buffers) * 2 (wr, wi) * Cin * Cout * TL * 4 bytes.
    """
    per_lane_bytes = 2 * 2 * Cin * Cout * 4
    tl_budget = max(128, (weight_budget_bytes // per_lane_bytes) // 128 * 128)
    L128 = _round_up(L, 128)
    tl = min(L128, tl_budget, 4096)
    # Keep >= 2 lane blocks on large problems so a megacore (v7x) can split the
    # "parallel" lane axis across its two TensorCores (no extra HBM traffic:
    # each weight lane range is still read exactly once).
    if tl == L128 and L128 >= 512:
        tl = _round_up(L128 // 2, 128)
    return tl


def _spectral_mix_kernel(xr_ref, xi_ref, wr_ref, wi_ref, or_ref, oi_ref):
    """out[b, o, l] = sum_i x[b, i, l] * w[i, o, l]   (complex multiply).

    Block shapes:
      xr_ref / xi_ref : (1, Cin,  TL)   one batch element, one lane block
      wr_ref / wi_ref : (Cin, Cout, TL) real / imag weights (resident across B)
      or_ref / oi_ref : (1, Cout, TL)
    """
    cin = wr_ref.shape[0]
    cout, tl = or_ref.shape[1], or_ref.shape[2]

    acc_r = jnp.zeros((cout, tl), jnp.float32)
    acc_i = jnp.zeros((cout, tl), jnp.float32)

    # Static unrolled loop over Cin: live state is just the two accumulators,
    # two (Cout, TL) weight rows and two (1, TL) x rows -> no (Cin, Cout, TL)
    # temporaries, so nothing spills the vreg file to VMEM.
    for i in range(cin):
        xr_i = xr_ref[0, i:i + 1, :]        # (1, TL) -> sublane-broadcast over Cout
        xi_i = xi_ref[0, i:i + 1, :]
        wr_i = wr_ref[i]                    # (Cout, TL)
        wi_i = wi_ref[i]
        acc_r = acc_r + (wr_i * xr_i - wi_i * xi_i)
        acc_i = acc_i + (wr_i * xi_i + wi_i * xr_i)

    or_ref[0] = acc_r
    oi_ref[0] = acc_i


def _spectral_mix(xr, xi, wr, wi):
    """Complex channel mixing on lane-dense slabs.

    xr, xi : (B, Cin, L)    float32  real/imag of the fused frequency corners
    wr, wi : (Cin, Cout, L) float32  real/imag of the fused weights
    returns (out_r, out_i) : (B, Cout, L) float32
    """
    B, Cin, L = xr.shape
    Cout = wr.shape[1]

    TL = _choose_lane_tile(L, Cin, Cout)
    L_pad = _round_up(L, TL)
    pad = L_pad - L
    if pad:
        # Zero padding keeps the sliced-off lanes inert; removed lanes never
        # reach the output.
        xr = jnp.pad(xr, ((0, 0), (0, 0), (0, pad)))
        xi = jnp.pad(xi, ((0, 0), (0, 0), (0, pad)))
        wr = jnp.pad(wr, ((0, 0), (0, 0), (0, pad)))
        wi = jnp.pad(wi, ((0, 0), (0, 0), (0, pad)))

    n_lane_blocks = L_pad // TL

    # Grid: lane blocks outer ("parallel"), batch inner ("arbitrary").  With B
    # innermost, the weight blocks' index (0, 0, j) is unchanged on consecutive
    # steps -> Pallas keeps them resident in VMEM instead of re-DMAing per batch.
    grid_spec = pltpu.PrefetchScalarGridSpec(
        num_scalar_prefetch=0,
        grid=(n_lane_blocks, B),
        in_specs=[
            pl.BlockSpec((1, Cin, TL), lambda j, b: (b, 0, j)),
            pl.BlockSpec((1, Cin, TL), lambda j, b: (b, 0, j)),
            pl.BlockSpec((Cin, Cout, TL), lambda j, b: (0, 0, j)),
            pl.BlockSpec((Cin, Cout, TL), lambda j, b: (0, 0, j)),
        ],
        out_specs=[
            pl.BlockSpec((1, Cout, TL), lambda j, b: (b, 0, j)),
            pl.BlockSpec((1, Cout, TL), lambda j, b: (b, 0, j)),
        ],
    )

    # VMEM budget: double-buffered weight / x / out blocks + accumulators.
    block_bytes = 4 * TL * (2 * 2 * Cin * Cout    # wr, wi (double-buffered)
                            + 2 * 2 * Cin         # xr, xi blocks
                            + 2 * 2 * Cout        # out_r, out_i blocks
                            + 2 * Cout)           # accumulators (if spilled)
    vmem_limit = max(min(int(block_bytes * 3 // 2) + (4 << 20), 64 << 20), 32 << 20)

    # Traffic model after the regrid: weights read once per lane block (not per B).
    flops = 8 * B * Cin * Cout * L_pad
    bytes_accessed = 4 * (2 * B * Cin * L_pad          # x read
                          + 2 * Cin * Cout * L_pad     # weights read once
                          + 2 * B * Cout * L_pad)      # out write

    out_r, out_i = pl.pallas_call(
        _spectral_mix_kernel,
        out_shape=(
            jax.ShapeDtypeStruct((B, Cout, L_pad), jnp.float32),
            jax.ShapeDtypeStruct((B, Cout, L_pad), jnp.float32),
        ),
        grid_spec=grid_spec,
        compiler_params=pltpu.CompilerParams(
            dimension_semantics=("parallel", "arbitrary"),
            vmem_limit_bytes=vmem_limit),
        cost_estimate=pl.CostEstimate(
            flops=flops, transcendentals=0, bytes_accessed=bytes_accessed),
    )(xr, xi, wr, wi)

    if pad:
        out_r = out_r[:, :, :L]
        out_i = out_i[:, :, :L]
    return out_r, out_i


def spectral_conv2d(x, weights1, weights2, modes1, modes2):
    """Forward pass of SpectralConv2d.

    x        : (B, Cin, H, W) float32, NCHW
    weights1 : (Cin, Cout, modes1, modes2, 2) float32  (last dim = real/imag)
    weights2 : (Cin, Cout, modes1, modes2, 2) float32
    returns  : (B, Cout, H, W) float32
    """
    B, Cin, H, W = x.shape
    Cout = weights1.shape[1]
    Wf = W // 2 + 1
    assert modes1 <= H, "modes1 must not exceed the spatial height"
    assert modes2 <= Wf, "modes2 must not exceed W // 2 + 1"

    # TODO(synk): rfft2 / irfft2 have no clean Pallas equivalent; kept in jnp.fft.
    x_ft = jnp.fft.rfft2(x)  # (B, Cin, H, Wf) complex64

    # Fuse the low- and high-frequency corners into one slab (one pallas_call),
    # then flatten the (2*modes1, modes2) mode grid into one lane axis.
    # (If corners overlap, the write order below matches PyTorch: second wins.)
    x_corners = jnp.concatenate(
        [x_ft[:, :, :modes1, :modes2], x_ft[:, :, -modes1:, :modes2]], axis=2)
    L = 2 * modes1 * modes2
    xr = jnp.real(x_corners).astype(jnp.float32).reshape(B, Cin, L)
    xi = jnp.imag(x_corners).astype(jnp.float32).reshape(B, Cin, L)

    # NOTE: for repeated calls (training step / inference loop) the fused weight
    # slabs could be precomputed once outside the step; kept here for a
    # self-contained functional interface.
    w_r = jnp.concatenate([weights1[..., 0], weights2[..., 0]], axis=2)
    w_i = jnp.concatenate([weights1[..., 1], weights2[..., 1]], axis=2)
    w_r = w_r.reshape(Cin, Cout, L).astype(jnp.float32)
    w_i = w_i.reshape(Cin, Cout, L).astype(jnp.float32)

    out_r, out_i = _spectral_mix(xr, xi, w_r, w_i)

    out_c = (out_r + 1j * out_i).astype(jnp.complex64)
    out_c = out_c.reshape(B, Cout, 2 * modes1, modes2)
    low, high = out_c[:, :, :modes1], out_c[:, :, modes1:]

    out_ft = jnp.zeros((B, Cout, H, Wf), dtype=jnp.complex64)
    # Same assignment order as PyTorch (second write wins if corners overlap).
    out_ft = out_ft.at[:, :, :modes1, :modes2].set(low)
    out_ft = out_ft.at[:, :, H - modes1:, :modes2].set(high)

    x_out = jnp.fft.irfft2(out_ft, s=(H, W))
    return x_out.astype(jnp.float32)


def _reference_forward(x, weights1, weights2, modes1, modes2):
    """Pure-JAX reference (mirrors the PyTorch forward)."""
    B, Cin, H, W = x.shape
    Cout = weights1.shape[1]
    Wf = W // 2 + 1
    x_ft = jnp.fft.rfft2(x)
    w1c = (weights1[..., 0] + 1j * weights1[..., 1]).astype(jnp.complex64)
    w2c = (weights2[..., 0] + 1j * weights2[..., 1]).astype(jnp.complex64)
    out_ft = jnp.zeros((B, Cout, H, Wf), dtype=jnp.complex64)
    out_ft = out_ft.at[:, :, :modes1, :modes2].set(
        jnp.einsum('bixy,ioxy->boxy', x_ft[:, :, :modes1, :modes2], w1c))
    out_ft = out_ft.at[:, :, H - modes1:, :modes2].set(
        jnp.einsum('bixy,ioxy->boxy', x_ft[:, :, -modes1:, :modes2], w2c))
    return jnp.fft.irfft2(out_ft, s=(H, W)).astype(jnp.float32)


if __name__ == "__main__":
    # Small shapes consistent with the module.
    B, Cin, Cout = 2, 4, 4
    H, W = 16, 16
    modes1, modes2 = 6, 8  # modes2 <= W//2 + 1 = 9

    key = jax.random.PRNGKey(0)
    k_x, k_w1, k_w2 = jax.random.split(key, 3)

    x = jax.random.normal(k_x, (B, Cin, H, W), dtype=jnp.float32)

    # Deterministic parameter init mirroring: scale * torch.rand(Cin, Cout, m1, m2, 2)
    scale = 1.0 / (Cin * Cout)
    weights1 = scale * jax.random.uniform(k_w1, (Cin, Cout, modes1, modes2, 2),
                                          dtype=jnp.float32)
    weights2 = scale * jax.random.uniform(k_w2, (Cin, Cout, modes1, modes2, 2),
                                          dtype=jnp.float32)

    fwd = jax.jit(functools.partial(spectral_conv2d, modes1=modes1, modes2=modes2))
    out = jax.block_until_ready(fwd(x, weights1, weights2))

    ref = _reference_forward(x, weights1, weights2, modes1, modes2)
    assert out.shape == (B, Cout, H, W), out.shape
    assert jnp.allclose(out, ref, atol=1e-4, rtol=1e-4), "mismatch vs reference"

    print("KERNEL_OK")
</pallas_src>

<mosaic_0001>
module attributes {stable_mosaic.version = 11 : i64} {
  func.func @_spectral_mix_kernel(%arg0: i32, %arg1: i32, %arg2: memref<1x4x128xf32, #tpu.memory_space<vmem>>, %arg3: memref<1x4x128xf32, #tpu.memory_space<vmem>>, %arg4: memref<4x4x128xf32, #tpu.memory_space<vmem>>, %arg5: memref<4x4x128xf32, #tpu.memory_space<vmem>>, %arg6: memref<1x4x128xf32, #tpu.memory_space<vmem>>, %arg7: memref<1x4x128xf32, #tpu.memory_space<vmem>>) attributes {dimension_semantics = [#tpu.dimension_semantics<parallel>, #tpu.dimension_semantics<arbitrary>], iteration_bounds = array<i64: 1, 2>, scalar_prefetch = 0 : i64, scratch_operands = 0 : i64, tpu.core_type = #tpu.core_type<tc>, window_params = [{transform_indices = @transform_0, window_bounds = array<i64: 1, 4, 128>}, {transform_indices = @transform_1, window_bounds = array<i64: 1, 4, 128>}, {transform_indices = @transform_2, window_bounds = array<i64: 4, 4, 128>}, {transform_indices = @transform_3, window_bounds = array<i64: 4, 4, 128>}, {transform_indices = @transform_4, window_bounds = array<i64: 1, 4, 128>}, {transform_indices = @transform_5, window_bounds = array<i64: 1, 4, 128>}]} {
    %cst = arith.constant 0.000000e+00 : f32
    %0 = vector.broadcast %cst : f32 to vector<4x128xf32>
    %cst_0 = arith.constant 0.000000e+00 : f32
    %1 = vector.broadcast %cst_0 : f32 to vector<4x128xf32>
    %c0 = arith.constant 0 : index
    %c0_1 = arith.constant 0 : index
    %c0_2 = arith.constant 0 : index
    %2 = vector.load %arg2[%c0, %c0_1, %c0_2] : memref<1x4x128xf32, #tpu.memory_space<vmem>>, vector<1x1x128xf32>
    %3 = vector.shape_cast %2 : vector<1x1x128xf32> to vector<1x128xf32>
    %c0_3 = arith.constant 0 : index
    %c0_4 = arith.constant 0 : index
    %c0_5 = arith.constant 0 : index
    %4 = vector.load %arg3[%c0_3, %c0_4, %c0_5] : memref<1x4x128xf32, #tpu.memory_space<vmem>>, vector<1x1x128xf32>
    %5 = vector.shape_cast %4 : vector<1x1x128xf32> to vector<1x128xf32>
    %c0_6 = arith.constant 0 : index
    %c0_7 = arith.constant 0 : index
    %c0_8 = arith.constant 0 : index
    %6 = vector.load %arg4[%c0_6, %c0_7, %c0_8] : memref<4x4x128xf32, #tpu.memory_space<vmem>>, vector<1x4x128xf32>
    %7 = vector.shape_cast %6 : vector<1x4x128xf32> to vector<4x128xf32>
    %c0_9 = arith.constant 0 : index
    %c0_10 = arith.constant 0 : index
    %c0_11 = arith.constant 0 : index
    %8 = vector.load %arg5[%c0_9, %c0_10, %c0_11] : memref<4x4x128xf32, #tpu.memory_space<vmem>>, vector<1x4x128xf32>
    %9 = vector.shape_cast %8 : vector<1x4x128xf32> to vector<4x128xf32>
    %10 = vector.broadcast %3 : vector<1x128xf32> to vector<4x128xf32>
    %11 = arith.mulf %7, %10 : vector<4x128xf32>
    %12 = vector.broadcast %5 : vector<1x128xf32> to vector<4x128xf32>
    %13 = arith.mulf %9, %12 : vector<4x128xf32>
    %14 = arith.subf %11, %13 : vector<4x128xf32>
    %15 = arith.addf %0, %14 : vector<4x128xf32>
    %16 = vector.broadcast %5 : vector<1x128xf32> to vector<4x128xf32>
    %17 = arith.mulf %7, %16 : vector<4x128xf32>
    %18 = vector.broadcast %3 : vector<1x128xf32> to vector<4x128xf32>
    %19 = arith.mulf %9, %18 : vector<4x128xf32>
    %20 = arith.addf %17, %19 : vector<4x128xf32>
    %21 = arith.addf %1, %20 : vector<4x128xf32>
    %c0_12 = arith.constant 0 : index
    %c1 = arith.constant 1 : index
    %c0_13 = arith.constant 0 : index
    %22 = vector.load %arg2[%c0_12, %c1, %c0_13] : memref<1x4x128xf32, #tpu.memory_space<vmem>>, vector<1x1x128xf32>
    %23 = vector.shape_cast %22 : vector<1x1x128xf32> to vector<1x128xf32>
    %c0_14 = arith.constant 0 : index
    %c1_15 = arith.constant 1 : index
    %c0_16 = arith.constant 0 : index
    %24 = vector.load %arg3[%c0_14, %c1_15, %c0_16] : memref<1x4x128xf32, #tpu.memory_space<vmem>>, vector<1x1x128xf32>
    %25 = vector.shape_cast %24 : vector<1x1x128xf32> to vector<1x128xf32>
    %c1_17 = arith.constant 1 : index
    %c0_18 = arith.constant 0 : index
    %c0_19 = arith.constant 0 : index
    %26 = vector.load %arg4[%c1_17, %c0_18, %c0_19] : memref<4x4x128xf32, #tpu.memory_space<vmem>>, vector<1x4x128xf32>
    %27 = vector.shape_cast %26 : vector<1x4x128xf32> to vector<4x128xf32>
    %c1_20 = arith.constant 1 : index
    %c0_21 = arith.constant 0 : index
    %c0_22 = arith.constant 0 : index
    %28 = vector.load %arg5[%c1_20, %c0_21, %c0_22] : memref<4x4x128xf32, #tpu.memory_space<vmem>>, vector<1x4x128xf32>
    %29 = vector.shape_cast %28 : vector<1x4x128xf32> to vector<4x128xf32>
    %30 = vector.broadcast %23 : vector<1x128xf32> to vector<4x128xf32>
    %31 = arith.mulf %27, %30 : vector<4x128xf32>
    %32 = vector.broadcast %25 : vector<1x128xf32> to vector<4x128xf32>
    %33 = arith.mulf %29, %32 : vector<4x128xf32>
    %34 = arith.subf %31, %33 : vector<4x128xf32>
    %35 = arith.addf %15, %34 : vector<4x128xf32>
    %36 = vector.broadcast %25 : vector<1x128xf32> to vector<4x128xf32>
    %37 = arith.mulf %27, %36 : vector<4x128xf32>
    %38 = vector.broadcast %23 : vector<1x128xf32> to vector<4x128xf32>
    %39 = arith.mulf %29, %38 : vector<4x128xf32>
    %40 = arith.addf %37, %39 : vector<4x128xf32>
    %41 = arith.addf %21, %40 : vector<4x128xf32>
    %c0_23 = arith.constant 0 : index
    %c2 = arith.constant 2 : index
    %c0_24 = arith.constant 0 : index
    %42 = vector.load %arg2[%c0_23, %c2, %c0_24] : memref<1x4x128xf32, #tpu.memory_space<vmem>>, vector<1x1x128xf32>
    %43 = vector.shape_cast %42 : vector<1x1x128xf32> to vector<1x128xf32>
    %c0_25 = arith.constant 0 : index
    %c2_26 = arith.constant 2 : index
    %c0_27 = arith.constant 0 : index
    %44 = vector.load %arg3[%c0_25, %c2_26, %c0_27] : memref<1x4x128xf32, #tpu.memory_space<vmem>>, vector<1x1x128xf32>
    %45 = vector.shape_cast %44 : vector<1x1x128xf32> to vector<1x128xf32>
    %c2_28 = arith.constant 2 : index
    %c0_29 = arith.constant 0 : index
    %c0_30 = arith.constant 0 : index
    %46 = vector.load %arg4[%c2_28, %c0_29, %c0_30] : memref<4x4x128xf32, #tpu.memory_space<vmem>>, vector<1x4x128xf32>
    %47 = vector.shape_cast %46 : vector<1x4x128xf32> to vector<4x128xf32>
    %c2_31 = arith.constant 2 : index
    %c0_32 = arith.constant 0 : index
    %c0_33 = arith.constant 0 : index
    %48 = vector.load %arg5[%c2_31, %c0_32, %c0_33] : memref<4x4x128xf32, #tpu.memory_space<vmem>>, vector<1x4x128xf32>
    %49 = vector.shape_cast %48 : vector<1x4x128xf32> to vector<4x128xf32>
    %50 = vector.broadcast %43 : vector<1x128xf32> to vector<4x128xf32>
    %51 = arith.mulf %47, %50 : vector<4x128xf32>
    %52 = vector.broadcast %45 : vector<1x128xf32> to vector<4x128xf32>
    %53 = arith.mulf %49, %52 : vector<4x128xf32>
    %54 = arith.subf %51, %53 : vector<4x128xf32>
    %55 = arith.addf %35, %54 : vector<4x128xf32>
    %56 = vector.broadcast %45 : vector<1x128xf32> to vector<4x128xf32>
    %57 = arith.mulf %47, %56 : vector<4x128xf32>
    %58 = vector.broadcast %43 : vector<1x128xf32> to vector<4x128xf32>
    %59 = arith.mulf %49, %58 : vector<4x128xf32>
    %60 = arith.addf %57, %59 : vector<4x128xf32>
    %61 = arith.addf %41, %60 : vector<4x128xf32>
    %c0_34 = arith.constant 0 : index
    %c3 = arith.constant 3 : index
    %c0_35 = arith.constant 0 : index
    %62 = vector.load %arg2[%c0_34, %c3, %c0_35] : memref<1x4x128xf32, #tpu.memory_space<vmem>>, vector<1x1x128xf32>
    %63 = vector.shape_cast %62 : vector<1x1x128xf32> to vector<1x128xf32>
    %c0_36 = arith.constant 0 : index
    %c3_37 = arith.constant 3 : index
    %c0_38 = arith.constant 0 : index
    %64 = vector.load %arg3[%c0_36, %c3_37, %c0_38] : memref<1x4x128xf32, #tpu.memory_space<vmem>>, vector<1x1x128xf32>
    %65 = vector.shape_cast %64 : vector<1x1x128xf32> to vector<1x128xf32>
    %c3_39 = arith.constant 3 : index
    %c0_40 = arith.constant 0 : index
    %c0_41 = arith.constant 0 : index
    %66 = vector.load %arg4[%c3_39, %c0_40, %c0_41] : memref<4x4x128xf32, #tpu.memory_space<vmem>>, vector<1x4x128xf32>
    %67 = vector.shape_cast %66 : vector<1x4x128xf32> to vector<4x128xf32>
    %c3_42 = arith.constant 3 : index
    %c0_43 = arith.constant 0 : index
    %c0_44 = arith.constant 0 : index
    %68 = vector.load %arg5[%c3_42, %c0_43, %c0_44] : memref<4x4x128xf32, #tpu.memory_space<vmem>>, vector<1x4x128xf32>
    %69 = vector.shape_cast %68 : vector<1x4x128xf32> to vector<4x128xf32>
    %70 = vector.broadcast %63 : vector<1x128xf32> to vector<4x128xf32>
    %71 = arith.mulf %67, %70 : vector<4x128xf32>
    %72 = vector.broadcast %65 : vector<1x128xf32> to vector<4x128xf32>
    %73 = arith.mulf %69, %72 : vector<4x128xf32>
    %74 = arith.subf %71, %73 : vector<4x128xf32>
    %75 = arith.addf %55, %74 : vector<4x128xf32>
    %76 = vector.broadcast %65 : vector<1x128xf32> to vector<4x128xf32>
    %77 = arith.mulf %67, %76 : vector<4x128xf32>
    %78 = vector.broadcast %63 : vector<1x128xf32> to vector<4x128xf32>
    %79 = arith.mulf %69, %78 : vector<4x128xf32>
    %80 = arith.addf %77, %79 : vector<4x128xf32>
    %81 = arith.addf %61, %80 : vector<4x128xf32>
    %c0_45 = arith.constant 0 : index
    %c0_46 = arith.constant 0 : index
    %c0_47 = arith.constant 0 : index
    %82 = vector.load %arg6[%c0_45, %c0_46, %c0_47] : memref<1x4x128xf32, #tpu.memory_space<vmem>>, vector<1x4x128xf32>
    %83 = vector.shape_cast %82 : vector<1x4x128xf32> to vector<4x128xf32>
    %84 = vector.shape_cast %75 : vector<4x128xf32> to vector<1x4x128xf32>
    tpu.vector_store %arg6[%c0_45, %c0_46, %c0_47], %84 {strides = array<i32>} : memref<1x4x128xf32, #tpu.memory_space<vmem>>, vector<1x4x128xf32>,
    %c0_48 = arith.constant 0 : index
    %c0_49 = arith.constant 0 : index
    %c0_50 = arith.constant 0 : index
    %85 = vector.load %arg7[%c0_48, %c0_49, %c0_50] : memref<1x4x128xf32, #tpu.memory_space<vmem>>, vector<1x4x128xf32>
    %86 = vector.shape_cast %85 : vector<1x4x128xf32> to vector<4x128xf32>
    %87 = vector.shape_cast %81 : vector<4x128xf32> to vector<1x4x128xf32>
    tpu.vector_store %arg7[%c0_48, %c0_49, %c0_50], %87 {strides = array<i32>} : memref<1x4x128xf32, #tpu.memory_space<vmem>>, vector<1x4x128xf32>,
    return
  }
  func.func @transform_0(%arg0: i32, %arg1: i32) -> (i32, i32, i32) {
    %c0_i32 = arith.constant 0 : i32
    %c0_i32_0 = arith.constant 0 : i32
    return %arg1, %c0_i32, %arg0 : i32, i32, i32
  }
  func.func @transform_1(%arg0: i32, %arg1: i32) -> (i32, i32, i32) {
    %c0_i32 = arith.constant 0 : i32
    %c0_i32_0 = arith.constant 0 : i32
    return %arg1, %c0_i32, %arg0 : i32, i32, i32
  }
  func.func @transform_2(%arg0: i32, %arg1: i32) -> (i32, i32, i32) {
    %c0_i32 = arith.constant 0 : i32
    %c0_i32_0 = arith.constant 0 : i32
    %c0_i32_1 = arith.constant 0 : i32
    return %c0_i32, %c0_i32_0, %arg0 : i32, i32, i32
  }
  func.func @transform_3(%arg0: i32, %arg1: i32) -> (i32, i32, i32) {
    %c0_i32 = arith.constant 0 : i32
    %c0_i32_0 = arith.constant 0 : i32
    %c0_i32_1 = arith.constant 0 : i32
    return %c0_i32, %c0_i32_0, %arg0 : i32, i32, i32
  }
  func.func @transform_4(%arg0: i32, %arg1: i32) -> (i32, i32, i32) {
    %c0_i32 = arith.constant 0 : i32
    %c0_i32_0 = arith.constant 0 : i32
    return %arg1, %c0_i32, %arg0 : i32, i32, i32
  }
  func.func @transform_5(%arg0: i32, %arg1: i32) -> (i32, i32, i32) {
    %c0_i32 = arith.constant 0 : i32
    %c0_i32_0 = arith.constant 0 : i32
    return %arg1, %c0_i32, %arg0 : i32, i32, i32
  }
}

</mosaic_0001>

<bundles_post_ra>
// kernel: spectral_conv2d.1
= control target key start
LH: loop header
LB: loop body
LE: loop exit
PB: predicated region body
PF: predicated region fallthrough
CT: control target
= control target key end

     0   :  { %s686_s18 = smov 0   ;;  %s688_s19 = smov 0   ;;  %s755_s0 = inlined_call_operand.vmem [shape: f32[2,4,128], index: 0, kind: input, shape index: {}]   ;;  %s756_s1 = inlined_call_operand.vmem [shape: f32[2,4,128], index: 1, kind: input, shape index: {}]   ;;  %s757_s2 = inlined_call_operand.vmem [shape: f32[4,4,128], index: 2, kind: input, shape index: {}]   ;;  %s758_s3 = inlined_call_operand.vmem [shape: f32[4,4,128], index: 3, kind: input, shape index: {}]   ;;  %s759_s4 = inlined_call_operand.vmem [shape: f32[2,4,128], index: 4, kind: output, shape index: {0}]   ;;  %s760_s5 = inlined_call_operand.vmem [shape: f32[2,4,128], index: 5, kind: output, shape index: {1}]  }
   0x1   :  { %s690_s20 = smov 0  }
   0x2 LB: > { %s25_s21 = sadd.s32 1, %s650_s19  ;;  %p587_p0 = scmp.ge.s32.totalorder %s654_s20, 1  ;;  %s654_s20 = sphi %s690_s20, %s16_s20   ;;  %s650_s19 = sphi %s688_s19, %s762_s19   ;;  %s646_s18 = sphi %s686_s18, %s761_s18  }
   0x3   : > { %p26_p1 = scmp.ge.s32.totalorder %s25_s21, 2  ;;  %p242_p2 = scmp.lt.s32.totalorder %s654_s20, 3 }
   0x5   : > { %s764_s21 = smov (%p26_p1, %s25_s21), 0  ;;  %p243_p3 = pnand %p587_p0, %p242_p2 }
   0x6   : > { %p296_p4 = scmp.lt.s32.totalorder (!%p243_p3), %s646_s18, 1 }
   0x7   : > { %246 = sbr.rel (%p243_p3) target bundleno = 30 (0x1e), region = 36 }
   0xc   : > { %s766_s18 = smov (!%p296_p4, %s646_s18), 1  ;;  %v334_v0 = vld [vmem:[%s757_s2] sm:$0xf]  ;;  %v594_v2 = vld [vmem:[%s757_s2 + $0x4] sm:$0xf] }
   0xd   : > { %v335_v1 = vld [vmem:[%s758_s3] sm:$0xf]  ;;  %s713_s28 = sshll.u32 %s766_s18, 2  ;;  %v595_v3 = vld [vmem:[%s758_s3 + $0x4] sm:$0xf] }
   0xe   : > { %v598_v4 = vld [vmem:[%s757_s2 + $0x8] sm:$0xf]  ;;  %s302_s10 = scalar_lea.vmem %s755_s0, %s713_s28  ;;  %s309_s13 = scalar_lea.vmem %s756_s1, %s713_s28  ;;  %v602_v6 = vld [vmem:[%s757_s2 + $0xc] sm:$0xf] }
   0xf   : > { %v599_v5 = vld [vmem:[%s758_s3 + $0x8] sm:$0xf]  ;;  %v603_v7 = vld [vmem:[%s758_s3 + $0xc] sm:$0xf]  ;;  %v592_v8 = vld [vmem:[%s302_s10] ss:$0 sm:$0xff]  ;;  %s324_s25 = scalar_lea.vmem %s759_s4, %s713_s28  ;;  %s331_s29 = scalar_lea.vmem %s760_s5, %s713_s28 }
  0x10   : > { %v593_v9 = vld [vmem:[%s309_s13] ss:$0 sm:$0xff]  ;;  %v596_v10 = vld [vmem:[%s302_s10 + $0x1] ss:$0 sm:$0xff]  ;;  %v340_v11 = vmul.f32 %v592_v8, %v334_v0  ;;  %v600_v15 = vld [vmem:[%s302_s10 + $0x2] ss:$0 sm:$0xff]  ;;  %v349_v23 = vmul.f32 %v592_v8, %v335_v1 }
  0x11   : > { %v345_v12 = vmul.f32 %v593_v9, %v335_v1  ;;  %v597_v13 = vld [vmem:[%s309_s13 + $0x1] ss:$0 sm:$0xff]  ;;  %v362_v14 = vmul.f32 %v596_v10, %v594_v2  ;;  %v601_v16 = vld [vmem:[%s309_s13 + $0x2] ss:$0 sm:$0xff]  ;;  %v348_v17 = vmul.f32 %v593_v9, %v334_v0  ;;  %v384_v19 = vmul.f32 %v600_v15, %v598_v4  ;;  %v604_v21 = vld [vmem:[%s302_s10 + $0x3] ss:$0 sm:$0xff] }
  0x12   : > { %v367_v18 = vmul.f32 %v597_v13, %v595_v3  ;;  %v389_v20 = vmul.f32 %v601_v16, %v599_v5  ;;  %v605_v22 = vld [vmem:[%s309_s13 + $0x3] ss:$0 sm:$0xff]  ;;  %v406_v25 = vmul.f32 %v604_v21, %v602_v6  ;;  %v370_v27 = vmul.f32 %v597_v13, %v594_v2 }
  0x13   : > { %v346_v24 = vsub.f32 %v340_v11, %v345_v12  ;;  %v411_v26 = vmul.f32 %v605_v22, %v603_v7  ;;  %v350_v30 = vadd.f32 %v349_v23, %v348_v17  ;;  %v371_v31 = vmul.f32 %v596_v10, %v595_v3 }
  0x14   : > { %v368_v28 = vsub.f32 %v362_v14, %v367_v18  ;;  %v390_v29 = vsub.f32 %v384_v19, %v389_v20  ;;  %v392_v32 = vmul.f32 %v601_v16, %v598_v4  ;;  %v393_v33 = vmul.f32 %v600_v15, %v599_v5 }
  0x15   : > { %v414_v34 = vmul.f32 %v605_v22, %v602_v6  ;;  %v412_v36 = vsub.f32 %v406_v25, %v411_v26  ;;  %v372_v37 = vadd.f32 %v371_v31, %v370_v27  ;;  %v415_v38 = vmul.f32 %v604_v21, %v603_v7 }
  0x16   : > { %v369_v35 = vadd.f32 %v368_v28, %v346_v24  ;;  %v394_v39 = vadd.f32 %v393_v33, %v392_v32 }
  0x17   : > { %v373_v41 = vadd.f32 %v372_v37, %v350_v30  ;;  %v416_v42 = vadd.f32 %v415_v38, %v414_v34 }
  0x18   : > { %v391_v40 = vadd.f32 %v390_v29, %v369_v35 }
  0x19   : > { %v395_v44 = vadd.f32 %v394_v39, %v373_v41 }
  0x1a   : > { %v413_v43 = vadd.f32 %v412_v36, %v391_v40 }
  0x1b   : > { %v417_v45 = vadd.f32 %v416_v42, %v395_v44 }
  0x1c   : > { %418 = vst [vmem:[%s324_s25] sm:$0xf] %v413_v43 }
  0x1d   : > { %419 = vst [vmem:[%s331_s29] sm:$0xf] %v417_v45 }
  0x1e PF: > { %s16_s20 = sadd.s32 1, %s654_s20   ;;  %s761_s18 = smov %s650_s19 }
  0x1f   : > { %p13_p5 = scmp.ge.s32.totalorder %s16_s20, 4   ;;  %s762_s19 = smov %s764_s21 }
  0x21   :  { %15 = sbr.rel (!%p13_p5) target bundleno = 2 (0x2), region = 93 }

// kernel: reverse.1
= control target key start
LH: loop header
LB: loop body
LE: loop exit
PB: predicated region body
PF: predicated region fallthrough
CT: control target
= control target key end

     0   :  { %v72_v3 = vlaneseq  ;;  %v65_v9 = vld [vmem:[#allocation0 + $0x7] ss:$-1 sm:$0xff]  ;;  %v79_v12 = vld [vmem:[#allocation0 + $0x17] ss:$-1 sm:$0xff]  ;;  %s331_s0 = inlined_call_operand.vmem [shape: f32[2,4,16,7], index: 0, kind: input, shape index: {}]   ;;  %s332_s1 = inlined_call_operand.vmem [shape: f32[2,4,16,7], index: 1, kind: output, shape index: {}]  }
   0x1   :  { %v45_v0 = vld [vmem:[%s331_s0] sm:$0xff]  ;;  %v47_v1 = vld [vmem:[%s331_s0 + $0x8] sm:$0xff]  ;;  %v49_v2 = vld [vmem:[%s331_s0 + $0x10] sm:$0xff]  ;;  %v66_v10 = vrot.slane %v65_v9, 1  ;;  %v80_v14 = vrot.slane %v79_v12, 1 }
   0x2   :  { %46 = vst [vmem:[#allocation0 + $0x8] sm:$0xff] %v45_v0  ;;  %48 = vst [vmem:[#allocation0 + $0x18] sm:$0xff] %v47_v1  ;;  %v51_v4 = vld [vmem:[%s331_s0 + $0x18] sm:$0xff]  ;;  %v53_v5 = vld [vmem:[%s331_s0 + $0x20] sm:$0xff]  ;;  %v73_v11 = vshrl.u32 %v72_v3, 7 }
   0x3   :  { %50 = vst [vmem:[#allocation0 + $0x28] sm:$0xff] %v49_v2  ;;  %v55_v6 = vld [vmem:[%s331_s0 + $0x28] sm:$0xff]  ;;  %52 = vst [vmem:[#allocation0 + $0x38] sm:$0xff] %v51_v4  ;;  %v57_v7 = vld [vmem:[%s331_s0 + $0x30] sm:$0xff] }
   0x4   :  { %54 = vst [vmem:[#allocation0 + $0x48] sm:$0xff] %v53_v5  ;;  %56 = vst [vmem:[#allocation0 + $0x58] sm:$0xff] %v55_v6  ;;  %v59_v8 = vld [vmem:[%s331_s0 + $0x38] sm:$0xff]  ;;  %v93_v13 = vld [vmem:[#allocation0 + $0x27] ss:$-1 sm:$0xff]  ;;  %vm74_vm0 = vcmp.lt.s32.totalorder %v73_v11, 7 }
   0x5   :  { %58 = vst [vmem:[#allocation0 + $0x68] sm:$0xff] %v57_v7  ;;  %60 = vst [vmem:[#allocation0 + $0x78] sm:$0xff] %v59_v8  ;;  %v94_v15 = vrot.slane %v93_v13, 1  ;;  %v107_v16 = vld [vmem:[#allocation0 + $0x37] ss:$-1 sm:$0xff] }
   0x6   :  { %67 = vst [vmem:[#allocation1] sm:$0xff] %v66_v10  ;;  %v108_v17 = vrot.slane %v107_v16, 1  ;;  %v121_v18 = vld [vmem:[#allocation0 + $0x47] ss:$-1 sm:$0xff]  ;;  %v135_v19 = vld [vmem:[#allocation0 + $0x57] ss:$-1 sm:$0xff] }
   0x7   :  { %81 = vst [vmem:[#allocation1 + $0x8] sm:$0xff] %v80_v14  ;;  %95 = vst [vmem:[#allocation1 + $0x10] sm:$0xff] %v94_v15  ;;  %v122_v20 = vrot.slane %v121_v18, 1  ;;  %v136_v21 = vrot.slane %v135_v19, 1  ;;  %v149_v22 = vld [vmem:[#allocation0 + $0x67] ss:$-1 sm:$0xff] }
   0x8   :  { %v163_v23 = vld [vmem:[#allocation0 + $0x77] ss:$-1 sm:$0xff]  ;;  %109 = vst [vmem:[#allocation1 + $0x18] sm:$0xff] %v108_v17  ;;  %v150_v24 = vrot.slane %v149_v22, 1 }
   0x9   :  { %v164_v25 = vrot.slane %v163_v23, 1  ;;  %v70_v26 = vld [vmem:[#allocation0 + $0xf] ss:$-1 sm:$0xff]  ;;  %v84_v27 = vld [vmem:[#allocation0 + $0x1f] ss:$-1 sm:$0xff]  ;;  %123 = vst [vmem:[#allocation1 + $0x20] sm:$0xff] %v122_v20 }
   0xa   :  { %v98_v28 = vld [vmem:[#allocation0 + $0x2f] ss:$-1 sm:$0xff]  ;;  %137 = vst [vmem:[#allocation1 + $0x28] sm:$0xff] %v136_v21  ;;  %v71_v29 = vrot.slane %v70_v26, 1  ;;  %v85_v30 = vrot.slane %v84_v27, 1  ;;  %151 = vst [vmem:[#allocation1 + $0x30] sm:$0xff] %v150_v24 }
   0xb   :  { %v99_v31 = vrot.slane %v98_v28, 1  ;;  %v112_v32 = vld [vmem:[#allocation0 + $0x3f] ss:$-1 sm:$0xff]  ;;  %165 = vst [vmem:[#allocation1 + $0x38] sm:$0xff] %v164_v25  ;;  %v126_v34 = vld [vmem:[#allocation0 + $0x4f] ss:$-1 sm:$0xff] }
   0xc   :  { %v113_v33 = vrot.slane %v112_v32, 1  ;;  %v140_v35 = vld [vmem:[#allocation0 + $0x5f] ss:$-1 sm:$0xff]  ;;  %75 = vst.msk [vmem:[#allocation1] sm:$0xff] %vm74_vm0, %v71_v29  ;;  %89 = vst.msk [vmem:[#allocation1 + $0x8] sm:$0xff] %vm74_vm0, %v85_v30  ;;  %v127_v36 = vrot.slane %v126_v34, 1 }
   0xd   :  { %103 = vst.msk [vmem:[#allocation1 + $0x10] sm:$0xff] %vm74_vm0, %v99_v31  ;;  %v141_v37 = vrot.slane %v140_v35, 1  ;;  %v154_v38 = vld [vmem:[#allocation0 + $0x6f] ss:$-1 sm:$0xff]  ;;  %v168_v39 = vld [vmem:[#allocation0 + $0x7f] ss:$-1 sm:$0xff] }
   0xe   :  { %117 = vst.msk [vmem:[#allocation1 + $0x18] sm:$0xff] %vm74_vm0, %v113_v33  ;;  %v155_v40 = vrot.slane %v154_v38, 1  ;;  %v169_v41 = vrot.slane %v168_v39, 1  ;;  %131 = vst.msk [vmem:[#allocation1 + $0x20] sm:$0xff] %vm74_vm0, %v127_v36 }
   0xf   :  { %145 = vst.msk [vmem:[#allocation1 + $0x28] sm:$0xff] %vm74_vm0, %v141_v37 }
  0x10   :  { %159 = vst.msk [vmem:[#allocation1 + $0x30] sm:$0xff] %vm74_vm0, %v155_v40  ;;  %173 = vst.msk [vmem:[#allocation1 + $0x38] sm:$0xff] %vm74_vm0, %v169_v41 }
  0x13   :  { %v216_v42 = vld [vmem:[#allocation1] sm:$0xff]  ;;  %v218_v43 = vld [vmem:[#allocation1 + $0x8] sm:$0xff] }
  0x14   :  { %v220_v44 = vld [vmem:[#allocation1 + $0x10] sm:$0xff]  ;;  %217 = vst [vmem:[%s332_s1] sm:$0xff] %v216_v42  ;;  %219 = vst [vmem:[%s332_s1 + $0x8] sm:$0xff] %v218_v43 }
  0x15   :  { %221 = vst [vmem:[%s332_s1 + $0x10] sm:$0xff] %v220_v44  ;;  %v222_v45 = vld [vmem:[#allocation1 + $0x18] sm:$0xff]  ;;  %v224_v46 = vld [vmem:[#allocation1 + $0x20] sm:$0xff] }
  0x16   :  { %223 = vst [vmem:[%s332_s1 + $0x18] sm:$0xff] %v222_v45  ;;  %v226_v47 = vld [vmem:[#allocation1 + $0x28] sm:$0xff]  ;;  %225 = vst [vmem:[%s332_s1 + $0x20] sm:$0xff] %v224_v46 }
  0x17   :  { %227 = vst [vmem:[%s332_s1 + $0x28] sm:$0xff] %v226_v47  ;;  %v228_v48 = vld [vmem:[#allocation1 + $0x30] sm:$0xff]  ;;  %v230_v49 = vld [vmem:[#allocation1 + $0x38] sm:$0xff] }
  0x18   :  { %229 = vst [vmem:[%s332_s1 + $0x30] sm:$0xff] %v228_v48  ;;  %231 = vst [vmem:[%s332_s1 + $0x38] sm:$0xff] %v230_v49 }

</bundles_post_ra>
